<compile_context>
chip_gen: v6e
topology: v6e:2x2x1
jax: 0.10.0
libtpu: 0.0.40
codegen_flags: <defaults>
</compile_context>

<pallas_src>
import functools
import math

import jax
import jax.numpy as jnp
from jax.experimental import pallas as pl
from jax.experimental.pallas import tpu as pltpu


# ---------------------------------------------------------------------------
# Fused kernel.
#   grid = (B, NG)   NG = num head groups, G = heads per group (NG * G = NH)
#   x      : [B, S, H]            block (1, S, H)        (resident across groups)
#   Wqkv   : [NG, H, 3*G*Dh]      block (1, H, 3*G*Dh)   (per-group slab, q pre-scaled)
#   bqkv   : [NG, 1, 3*G*Dh]      block (1, 1, 3*G*Dh)
#   Wo     : [NH, Dh, H]          block (G, Dh, H)       (this group's heads)
#   bo/gamma/beta : [1, H]        block (1, H)           (resident)
#   mask   : [B, 1, S]            block (1, 1, S)        (additive, optional)
#   out    : [B, S, H]            block (1, S, H)        (written at last group)
#   acc    : VMEM (S, H) f32 scratch accumulator         (only when NG > 1)
# ---------------------------------------------------------------------------
def _fused_attn_kernel(*refs, eps, num_groups, heads_per_group, head_dim,
                       compute_dtype, approx_recip, has_mask):
    refs = list(refs)
    x_ref = refs.pop(0)
    wqkv_ref = refs.pop(0)
    bqkv_ref = refs.pop(0)
    wo_ref = refs.pop(0)
    bo_ref = refs.pop(0)
    gamma_ref = refs.pop(0)
    beta_ref = refs.pop(0)
    mask_ref = refs.pop(0) if has_mask else None
    o_ref = refs.pop(0)
    acc_ref = refs.pop(0) if num_groups > 1 else None

    grp = pl.program_id(1)

    x = x_ref[0]                                    # [S, H] (input dtype)
    xc = x.astype(compute_dtype)

    # Fused QKV projection for this head group -> [S, 3*G*Dh], f32 accumulate.
    # (1/sqrt(Dh) is already folded into the q columns / bias.)
    qkv = jnp.dot(xc, wqkv_ref[0], preferred_element_type=jnp.float32)
    qkv = qkv + bqkv_ref[0]

    gd = heads_per_group * head_dim
    # TODO(synk): for very long sequences (S >~ 2k) tile the key/value axis with
    #             an online-softmax (flash) inner loop instead of materializing
    #             the full [S, S] scores matrix (needed for v7x's 64 MiB VMEM).
    contrib = None
    for h in range(heads_per_group):                # statically unrolled, G small
        lo = h * head_dim
        hi = lo + head_dim
        q = qkv[:, lo:hi].astype(compute_dtype)                     # [S, Dh] (pre-scaled)
        k = qkv[:, gd + lo:gd + hi].astype(compute_dtype)           # [S, Dh]
        v = qkv[:, 2 * gd + lo:2 * gd + hi].astype(compute_dtype)   # [S, Dh]

        # q @ k^T without materializing a transpose (contract last dims).
        scores = jax.lax.dot_general(
            q, k, dimension_numbers=(((1,), (1,)), ((), ())),
            preferred_element_type=jnp.float32)                     # [S, S]
        if mask_ref is not None:
            scores = scores + mask_ref[0]           # broadcast [1, S] over rows

        m = jnp.max(scores, axis=-1, keepdims=True)
        p = jnp.exp(scores - m)
        p = p * pl.reciprocal(jnp.sum(p, axis=-1, keepdims=True),
                              approx=approx_recip)

        ctx_h = jnp.dot(p.astype(compute_dtype), v,
                        preferred_element_type=jnp.float32)         # [S, Dh]
        # This head's contribution of the output projection, kept in registers.
        c = jnp.dot(ctx_h.astype(compute_dtype), wo_ref[h],
                    preferred_element_type=jnp.float32)              # [S, H]
        contrib = c if contrib is None else contrib + c

    def _finish(total):
        y = total + bo_ref[...] + x.astype(jnp.float32)   # dense bias + residual
        mean = jnp.mean(y, axis=-1, keepdims=True)
        var = jnp.mean(jnp.square(y - mean), axis=-1, keepdims=True)
        yn = (y - mean) * jax.lax.rsqrt(var + eps)
        o_ref[0] = (yn * gamma_ref[...] + beta_ref[...]).astype(o_ref.dtype)

    if num_groups == 1:
        # Static fast path: no VMEM accumulator round-trip at all.
        _finish(contrib)
    else:
        @pl.when(grp == 0)
        def _init():
            acc_ref[...] = jnp.zeros_like(acc_ref)

        acc_ref[...] += contrib                       # one RMW per group

        @pl.when(grp == num_groups - 1)
        def _finalize():
            _finish(acc_ref[...])


def _pick_heads_per_group(num_heads, head_dim):
    """Smallest divisor G of num_heads with G*head_dim >= 128 (lane-dense)."""
    for g in range(1, num_heads + 1):
        if num_heads % g == 0 and g * head_dim >= 128:
            return g
    return num_heads


# ---------------------------------------------------------------------------
# Python wrapper
# ---------------------------------------------------------------------------
def roberta_attention_forward(hidden_states, params, attention_mask=None, *,
                              num_heads, layer_norm_eps=1e-12,
                              compute_dtype=jnp.float32, heads_per_group=None):
    B, S, H = hidden_states.shape
    NH = num_heads
    Dh = H // NH
    if heads_per_group is None:
        heads_per_group = _pick_heads_per_group(NH, Dh)
    G = heads_per_group
    assert NH % G == 0, "heads_per_group must divide num_heads"
    NG = NH // G
    scale = 1.0 / math.sqrt(Dh)
    approx_recip = jnp.dtype(compute_dtype) == jnp.dtype(jnp.bfloat16)

    # --- weight repacking (plain JAX glue, happens once under jit) ---
    def group_w(w):   # [H, H] (in, out) -> [NG, H, G*Dh]
        return jnp.transpose(w.reshape(H, NG, G * Dh), (1, 0, 2))

    def group_b(b):   # [H] -> [NG, 1, G*Dh]
        return b.reshape(NG, 1, G * Dh)

    # Fold the attention scale into the query projection (done once at repack).
    wqkv = jnp.concatenate([group_w(params["wq"] * scale), group_w(params["wk"]),
                            group_w(params["wv"])], axis=-1).astype(compute_dtype)
    bqkv = jnp.concatenate([group_b(params["bq"] * scale), group_b(params["bk"]),
                            group_b(params["bv"])], axis=-1).astype(jnp.float32)
    wo = params["wo"].reshape(NH, Dh, H).astype(compute_dtype)       # per-head slabs
    bo = params["bo"].reshape(1, H).astype(jnp.float32)
    gamma = params["ln_gamma"].reshape(1, H).astype(jnp.float32)
    beta = params["ln_beta"].reshape(1, H).astype(jnp.float32)

    has_mask = attention_mask is not None

    inputs = [hidden_states, wqkv, bqkv, wo, bo, gamma, beta]
    in_specs = [
        pl.BlockSpec((1, S, H), lambda b, g: (b, 0, 0)),              # x (resident over g)
        pl.BlockSpec((1, H, 3 * G * Dh), lambda b, g: (g, 0, 0)),     # Wqkv group slab
        pl.BlockSpec((1, 1, 3 * G * Dh), lambda b, g: (g, 0, 0)),     # bqkv group slab
        pl.BlockSpec((G, Dh, H), lambda b, g: (g, 0, 0)),             # Wo rows for group
        pl.BlockSpec((1, H), lambda b, g: (0, 0)),                    # bo
        pl.BlockSpec((1, H), lambda b, g: (0, 0)),                    # gamma
        pl.BlockSpec((1, H), lambda b, g: (0, 0)),                    # beta
    ]
    if has_mask:
        # Additive key mask; per-head masks are not supported.
        mask = attention_mask.astype(jnp.float32).reshape(B, 1, S)
        inputs.append(mask)
        in_specs.append(pl.BlockSpec((1, 1, S), lambda b, g: (b, 0, 0)))

    kernel = functools.partial(
        _fused_attn_kernel, eps=layer_norm_eps,
        num_groups=NG, heads_per_group=G, head_dim=Dh,
        compute_dtype=compute_dtype, approx_recip=approx_recip,
        has_mask=has_mask)

    # The f32 accumulator scratch is only needed when the head-group axis is a
    # real reduction (NG > 1); skip it otherwise to save VMEM.
    scratch_shapes = [pltpu.VMEM((S, H), jnp.float32)] if NG > 1 else []

    out = pl.pallas_call(
        kernel,
        out_shape=jax.ShapeDtypeStruct((B, S, H), hidden_states.dtype),
        grid_spec=pltpu.PrefetchScalarGridSpec(
            num_scalar_prefetch=0,
            grid=(B, NG),                       # head-group axis = reduction
            in_specs=in_specs,
            out_specs=pl.BlockSpec((1, S, H), lambda b, g: (b, 0, 0)),
            scratch_shapes=scratch_shapes),
        compiler_params=pltpu.CompilerParams(
            dimension_semantics=("parallel", "arbitrary")),
    )(*inputs)
    return out


# ---------------------------------------------------------------------------
# Pure-JAX reference (sanity check of the kernel path)
# ---------------------------------------------------------------------------
def roberta_attention_ref(x, params, attention_mask=None, *, num_heads,
                          layer_norm_eps=1e-12):
    B, S, H = x.shape
    NH = num_heads
    Dh = H // NH
    q = (x @ params["wq"] + params["bq"]).reshape(B, S, NH, Dh).transpose(0, 2, 1, 3)
    k = (x @ params["wk"] + params["bk"]).reshape(B, S, NH, Dh).transpose(0, 2, 1, 3)
    v = (x @ params["wv"] + params["bv"]).reshape(B, S, NH, Dh).transpose(0, 2, 1, 3)
    s = jnp.einsum("bhqd,bhkd->bhqk", q, k) / math.sqrt(Dh)
    if attention_mask is not None:
        s = s + attention_mask.reshape(B, 1, 1, S)
    p = jax.nn.softmax(s, axis=-1)
    ctx = jnp.einsum("bhqk,bhkd->bhqd", p, v).transpose(0, 2, 1, 3).reshape(B, S, H)
    y = ctx @ params["wo"] + params["bo"] + x
    mean = jnp.mean(y, axis=-1, keepdims=True)
    var = jnp.mean(jnp.square(y - mean), axis=-1, keepdims=True)
    yn = (y - mean) * jax.lax.rsqrt(var + layer_norm_eps)
    return yn * params["ln_gamma"] + params["ln_beta"]


if __name__ == "__main__":
    # Small config consistent with the module: hidden=32, heads=4, seq=8, batch=2.
    B, S, H, NH = 2, 8, 32, 4

    key = jax.random.PRNGKey(0)
    keys = jax.random.split(key, 10)
    scale = 0.02
    params = {
        "wq": scale * jax.random.normal(keys[0], (H, H), jnp.float32),
        "bq": scale * jax.random.normal(keys[1], (H,), jnp.float32),
        "wk": scale * jax.random.normal(keys[2], (H, H), jnp.float32),
        "bk": scale * jax.random.normal(keys[3], (H,), jnp.float32),
        "wv": scale * jax.random.normal(keys[4], (H, H), jnp.float32),
        "bv": scale * jax.random.normal(keys[5], (H,), jnp.float32),
        "wo": scale * jax.random.normal(keys[6], (H, H), jnp.float32),
        "bo": scale * jax.random.normal(keys[7], (H,), jnp.float32),
        "ln_gamma": jnp.ones((H,), jnp.float32),
        "ln_beta": jnp.zeros((H,), jnp.float32),
    }
    hidden_states = jax.random.normal(keys[8], (B, S, H), jnp.float32)

    # Additive padding mask (second sequence has 3 padded positions).
    lens = jnp.array([S, S - 3])
    attn_mask = jnp.where(jnp.arange(S)[None, :] < lens[:, None],
                          0.0, -1e9).astype(jnp.float32)        # [B, S], additive

    # --- f32 path, no mask, single head group (fast path): tight check ---
    out = roberta_attention_forward(hidden_states, params, attention_mask=None,
                                    num_heads=NH, compute_dtype=jnp.float32)
    out = jax.block_until_ready(out)
    ref = roberta_attention_ref(hidden_states, params, num_heads=NH)
    assert out.shape == (B, S, H)
    assert jnp.allclose(out, ref, atol=1e-5, rtol=1e-5), "f32 mismatch vs reference"

    # --- f32 path, mask, NG=2 head groups (exercise VMEM accumulator path) ---
    out_g = roberta_attention_forward(hidden_states, params,
                                      attention_mask=attn_mask, num_heads=NH,
                                      compute_dtype=jnp.float32,
                                      heads_per_group=2)
    out_g = jax.block_until_ready(out_g)
    ref_m = roberta_attention_ref(hidden_states, params, attention_mask=attn_mask,
                                  num_heads=NH)
    assert jnp.allclose(out_g, ref_m, atol=1e-5, rtol=1e-5), \
        "grouped-accumulator mismatch vs reference"

    # --- bf16-matmul path, with additive padding mask: loose check ---
    out_bf16 = roberta_attention_forward(hidden_states, params,
                                         attention_mask=attn_mask,
                                         num_heads=NH,
                                         compute_dtype=jnp.bfloat16)
    out_bf16 = jax.block_until_ready(out_bf16)
    assert out_bf16.shape == (B, S, H)
    assert jnp.all(jnp.isfinite(out_bf16))
    assert jnp.allclose(out_bf16, ref_m, atol=5e-2, rtol=0.0), \
        "bf16 mismatch vs reference"

    print("KERNEL_OK")
</pallas_src>

<mosaic_0001>
module attributes {stable_mosaic.version = 11 : i64} {
  func.func @_fused_attn_kernel(%arg0: i32, %arg1: i32, %arg2: memref<1x8x32xf32, #tpu.memory_space<vmem>>, %arg3: memref<1x32x96xf32, #tpu.memory_space<vmem>>, %arg4: memref<1x1x96xf32, #tpu.memory_space<vmem>>, %arg5: memref<4x8x32xf32, #tpu.memory_space<vmem>>, %arg6: memref<1x32xf32, #tpu.memory_space<vmem>>, %arg7: memref<1x32xf32, #tpu.memory_space<vmem>>, %arg8: memref<1x32xf32, #tpu.memory_space<vmem>>, %arg9: memref<1x8x32xf32, #tpu.memory_space<vmem>>) attributes {dimension_semantics = [#tpu.dimension_semantics<parallel>, #tpu.dimension_semantics<arbitrary>], iteration_bounds = array<i64: 2, 1>, scalar_prefetch = 0 : i64, scratch_operands = 0 : i64, tpu.core_type = #tpu.core_type<tc>, window_params = [{transform_indices = @transform_0, window_bounds = array<i64: 1, 8, 32>}, {transform_indices = @transform_1, window_bounds = array<i64: 1, 32, 96>}, {transform_indices = @transform_2, window_bounds = array<i64: 1, 1, 96>}, {transform_indices = @transform_3, window_bounds = array<i64: 4, 8, 32>}, {pipeline_mode = #tpu.pipeline_mode<synchronous>, transform_indices = @transform_4, window_bounds = array<i64: 1, 32>}, {pipeline_mode = #tpu.pipeline_mode<synchronous>, transform_indices = @transform_5, window_bounds = array<i64: 1, 32>}, {pipeline_mode = #tpu.pipeline_mode<synchronous>, transform_indices = @transform_6, window_bounds = array<i64: 1, 32>}, {transform_indices = @transform_7, window_bounds = array<i64: 1, 8, 32>}]} {
    %c0 = arith.constant 0 : index
    %c0_0 = arith.constant 0 : index
    %c0_1 = arith.constant 0 : index
    %0 = vector.load %arg2[%c0, %c0_0, %c0_1] : memref<1x8x32xf32, #tpu.memory_space<vmem>>, vector<1x8x32xf32>
    %1 = vector.shape_cast %0 : vector<1x8x32xf32> to vector<8x32xf32>
    %c0_2 = arith.constant 0 : index
    %c0_3 = arith.constant 0 : index
    %c0_4 = arith.constant 0 : index
    %2 = vector.load %arg3[%c0_2, %c0_3, %c0_4] : memref<1x32x96xf32, #tpu.memory_space<vmem>>, vector<1x32x96xf32>
    %3 = vector.shape_cast %2 : vector<1x32x96xf32> to vector<32x96xf32>
    %cst = arith.constant dense<0.000000e+00> : vector<8x96xf32>
    %4 = tpu.matmul %1, %3, %cst {dimension_numbers = #tpu.dot_dimension_numbers<[1], [0], [0], [1], [0, 0, 1, 1], [], []>} : vector<8x32xf32>, vector<32x96xf32>, vector<8x96xf32> -> vector<8x96xf32>
    %c0_5 = arith.constant 0 : index
    %c0_6 = arith.constant 0 : index
    %c0_7 = arith.constant 0 : index
    %5 = vector.load %arg4[%c0_5, %c0_6, %c0_7] : memref<1x1x96xf32, #tpu.memory_space<vmem>>, vector<1x1x96xf32>
    %6 = vector.shape_cast %5 : vector<1x1x96xf32> to vector<1x96xf32>
    %7 = vector.broadcast %6 : vector<1x96xf32> to vector<8x96xf32>
    %8 = arith.addf %4, %7 : vector<8x96xf32>
    %9 = vector.extract_strided_slice %8 {offsets = [0, 0], sizes = [8, 8], strides = [1, 1]} : vector<8x96xf32> to vector<8x8xf32>
    %10 = vector.extract_strided_slice %8 {offsets = [0, 32], sizes = [8, 8], strides = [1, 1]} : vector<8x96xf32> to vector<8x8xf32>
    %11 = vector.extract_strided_slice %8 {offsets = [0, 64], sizes = [8, 8], strides = [1, 1]} : vector<8x96xf32> to vector<8x8xf32>
    %cst_8 = arith.constant dense<0.000000e+00> : vector<8x8xf32>
    %12 = tpu.matmul %9, %10, %cst_8 {dimension_numbers = #tpu.dot_dimension_numbers<[1], [1], [0], [0], [0, 0, 1, 0], [], []>} : vector<8x8xf32>, vector<8x8xf32>, vector<8x8xf32> -> vector<8x8xf32>
    %cst_9 = arith.constant dense<0xFF800000> : vector<8xf32>
    %13 = vector.multi_reduction <maximumf>, %12, %cst_9 [1] : vector<8x8xf32> to vector<8xf32>
    %14 = vector.shape_cast %13 : vector<8xf32> to vector<8x1xf32>
    %15 = vector.broadcast %14 : vector<8x1xf32> to vector<8x8xf32>
    %16 = arith.subf %12, %15 : vector<8x8xf32>
    %17 = math.exp %16 : vector<8x8xf32>
    %cst_10 = arith.constant dense<0.000000e+00> : vector<8xf32>
    %18 = vector.multi_reduction <add>, %17, %cst_10 [1] : vector<8x8xf32> to vector<8xf32>
    %19 = vector.shape_cast %18 : vector<8xf32> to vector<8x1xf32>
    %20 = tpu.reciprocal %19 : vector<8x1xf32> -> vector<8x1xf32>
    %21 = vector.broadcast %20 : vector<8x1xf32> to vector<8x8xf32>
    %22 = arith.mulf %17, %21 : vector<8x8xf32>
    %cst_11 = arith.constant dense<0.000000e+00> : vector<8x8xf32>
    %23 = tpu.matmul %22, %11, %cst_11 {dimension_numbers = #tpu.dot_dimension_numbers<[1], [0], [0], [1], [0, 0, 1, 1], [], []>} : vector<8x8xf32>, vector<8x8xf32>, vector<8x8xf32> -> vector<8x8xf32>
    %c0_12 = arith.constant 0 : index
    %c0_13 = arith.constant 0 : index
    %c0_14 = arith.constant 0 : index
    %24 = vector.load %arg5[%c0_12, %c0_13, %c0_14] : memref<4x8x32xf32, #tpu.memory_space<vmem>>, vector<1x8x32xf32>
    %25 = vector.shape_cast %24 : vector<1x8x32xf32> to vector<8x32xf32>
    %cst_15 = arith.constant dense<0.000000e+00> : vector<8x32xf32>
    %26 = tpu.matmul %23, %25, %cst_15 {dimension_numbers = #tpu.dot_dimension_numbers<[1], [0], [0], [1], [0, 0, 1, 1], [], []>} : vector<8x8xf32>, vector<8x32xf32>, vector<8x32xf32> -> vector<8x32xf32>
    %27 = vector.extract_strided_slice %8 {offsets = [0, 8], sizes = [8, 8], strides = [1, 1]} : vector<8x96xf32> to vector<8x8xf32>
    %28 = vector.extract_strided_slice %8 {offsets = [0, 40], sizes = [8, 8], strides = [1, 1]} : vector<8x96xf32> to vector<8x8xf32>
    %29 = vector.extract_strided_slice %8 {offsets = [0, 72], sizes = [8, 8], strides = [1, 1]} : vector<8x96xf32> to vector<8x8xf32>
    %cst_16 = arith.constant dense<0.000000e+00> : vector<8x8xf32>
    %30 = tpu.matmul %27, %28, %cst_16 {dimension_numbers = #tpu.dot_dimension_numbers<[1], [1], [0], [0], [0, 0, 1, 0], [], []>} : vector<8x8xf32>, vector<8x8xf32>, vector<8x8xf32> -> vector<8x8xf32>
    %cst_17 = arith.constant dense<0xFF800000> : vector<8xf32>
    %31 = vector.multi_reduction <maximumf>, %30, %cst_17 [1] : vector<8x8xf32> to vector<8xf32>
    %32 = vector.shape_cast %31 : vector<8xf32> to vector<8x1xf32>
    %33 = vector.broadcast %32 : vector<8x1xf32> to vector<8x8xf32>
    %34 = arith.subf %30, %33 : vector<8x8xf32>
    %35 = math.exp %34 : vector<8x8xf32>
    %cst_18 = arith.constant dense<0.000000e+00> : vector<8xf32>
    %36 = vector.multi_reduction <add>, %35, %cst_18 [1] : vector<8x8xf32> to vector<8xf32>
    %37 = vector.shape_cast %36 : vector<8xf32> to vector<8x1xf32>
    %38 = tpu.reciprocal %37 : vector<8x1xf32> -> vector<8x1xf32>
    %39 = vector.broadcast %38 : vector<8x1xf32> to vector<8x8xf32>
    %40 = arith.mulf %35, %39 : vector<8x8xf32>
    %cst_19 = arith.constant dense<0.000000e+00> : vector<8x8xf32>
    %41 = tpu.matmul %40, %29, %cst_19 {dimension_numbers = #tpu.dot_dimension_numbers<[1], [0], [0], [1], [0, 0, 1, 1], [], []>} : vector<8x8xf32>, vector<8x8xf32>, vector<8x8xf32> -> vector<8x8xf32>
    %c1 = arith.constant 1 : index
    %c0_20 = arith.constant 0 : index
    %c0_21 = arith.constant 0 : index
    %42 = vector.load %arg5[%c1, %c0_20, %c0_21] : memref<4x8x32xf32, #tpu.memory_space<vmem>>, vector<1x8x32xf32>
    %43 = vector.shape_cast %42 : vector<1x8x32xf32> to vector<8x32xf32>
    %cst_22 = arith.constant dense<0.000000e+00> : vector<8x32xf32>
    %44 = tpu.matmul %41, %43, %cst_22 {dimension_numbers = #tpu.dot_dimension_numbers<[1], [0], [0], [1], [0, 0, 1, 1], [], []>} : vector<8x8xf32>, vector<8x32xf32>, vector<8x32xf32> -> vector<8x32xf32>
    %45 = arith.addf %26, %44 : vector<8x32xf32>
    %46 = vector.extract_strided_slice %8 {offsets = [0, 16], sizes = [8, 8], strides = [1, 1]} : vector<8x96xf32> to vector<8x8xf32>
    %47 = vector.extract_strided_slice %8 {offsets = [0, 48], sizes = [8, 8], strides = [1, 1]} : vector<8x96xf32> to vector<8x8xf32>
    %48 = vector.extract_strided_slice %8 {offsets = [0, 80], sizes = [8, 8], strides = [1, 1]} : vector<8x96xf32> to vector<8x8xf32>
    %cst_23 = arith.constant dense<0.000000e+00> : vector<8x8xf32>
    %49 = tpu.matmul %46, %47, %cst_23 {dimension_numbers = #tpu.dot_dimension_numbers<[1], [1], [0], [0], [0, 0, 1, 0], [], []>} : vector<8x8xf32>, vector<8x8xf32>, vector<8x8xf32> -> vector<8x8xf32>
    %cst_24 = arith.constant dense<0xFF800000> : vector<8xf32>
    %50 = vector.multi_reduction <maximumf>, %49, %cst_24 [1] : vector<8x8xf32> to vector<8xf32>
    %51 = vector.shape_cast %50 : vector<8xf32> to vector<8x1xf32>
    %52 = vector.broadcast %51 : vector<8x1xf32> to vector<8x8xf32>
    %53 = arith.subf %49, %52 : vector<8x8xf32>
    %54 = math.exp %53 : vector<8x8xf32>
    %cst_25 = arith.constant dense<0.000000e+00> : vector<8xf32>
    %55 = vector.multi_reduction <add>, %54, %cst_25 [1] : vector<8x8xf32> to vector<8xf32>
    %56 = vector.shape_cast %55 : vector<8xf32> to vector<8x1xf32>
    %57 = tpu.reciprocal %56 : vector<8x1xf32> -> vector<8x1xf32>
    %58 = vector.broadcast %57 : vector<8x1xf32> to vector<8x8xf32>
    %59 = arith.mulf %54, %58 : vector<8x8xf32>
    %cst_26 = arith.constant dense<0.000000e+00> : vector<8x8xf32>
    %60 = tpu.matmul %59, %48, %cst_26 {dimension_numbers = #tpu.dot_dimension_numbers<[1], [0], [0], [1], [0, 0, 1, 1], [], []>} : vector<8x8xf32>, vector<8x8xf32>, vector<8x8xf32> -> vector<8x8xf32>
    %c2 = arith.constant 2 : index
    %c0_27 = arith.constant 0 : index
    %c0_28 = arith.constant 0 : index
    %61 = vector.load %arg5[%c2, %c0_27, %c0_28] : memref<4x8x32xf32, #tpu.memory_space<vmem>>, vector<1x8x32xf32>
    %62 = vector.shape_cast %61 : vector<1x8x32xf32> to vector<8x32xf32>
    %cst_29 = arith.constant dense<0.000000e+00> : vector<8x32xf32>
    %63 = tpu.matmul %60, %62, %cst_29 {dimension_numbers = #tpu.dot_dimension_numbers<[1], [0], [0], [1], [0, 0, 1, 1], [], []>} : vector<8x8xf32>, vector<8x32xf32>, vector<8x32xf32> -> vector<8x32xf32>
    %64 = arith.addf %45, %63 : vector<8x32xf32>
    %65 = vector.extract_strided_slice %8 {offsets = [0, 24], sizes = [8, 8], strides = [1, 1]} : vector<8x96xf32> to vector<8x8xf32>
    %66 = vector.extract_strided_slice %8 {offsets = [0, 56], sizes = [8, 8], strides = [1, 1]} : vector<8x96xf32> to vector<8x8xf32>
    %67 = vector.extract_strided_slice %8 {offsets = [0, 88], sizes = [8, 8], strides = [1, 1]} : vector<8x96xf32> to vector<8x8xf32>
    %cst_30 = arith.constant dense<0.000000e+00> : vector<8x8xf32>
    %68 = tpu.matmul %65, %66, %cst_30 {dimension_numbers = #tpu.dot_dimension_numbers<[1], [1], [0], [0], [0, 0, 1, 0], [], []>} : vector<8x8xf32>, vector<8x8xf32>, vector<8x8xf32> -> vector<8x8xf32>
    %cst_31 = arith.constant dense<0xFF800000> : vector<8xf32>
    %69 = vector.multi_reduction <maximumf>, %68, %cst_31 [1] : vector<8x8xf32> to vector<8xf32>
    %70 = vector.shape_cast %69 : vector<8xf32> to vector<8x1xf32>
    %71 = vector.broadcast %70 : vector<8x1xf32> to vector<8x8xf32>
    %72 = arith.subf %68, %71 : vector<8x8xf32>
    %73 = math.exp %72 : vector<8x8xf32>
    %cst_32 = arith.constant dense<0.000000e+00> : vector<8xf32>
    %74 = vector.multi_reduction <add>, %73, %cst_32 [1] : vector<8x8xf32> to vector<8xf32>
    %75 = vector.shape_cast %74 : vector<8xf32> to vector<8x1xf32>
    %76 = tpu.reciprocal %75 : vector<8x1xf32> -> vector<8x1xf32>
    %77 = vector.broadcast %76 : vector<8x1xf32> to vector<8x8xf32>
    %78 = arith.mulf %73, %77 : vector<8x8xf32>
    %cst_33 = arith.constant dense<0.000000e+00> : vector<8x8xf32>
    %79 = tpu.matmul %78, %67, %cst_33 {dimension_numbers = #tpu.dot_dimension_numbers<[1], [0], [0], [1], [0, 0, 1, 1], [], []>} : vector<8x8xf32>, vector<8x8xf32>, vector<8x8xf32> -> vector<8x8xf32>
    %c3 = arith.constant 3 : index
    %c0_34 = arith.constant 0 : index
    %c0_35 = arith.constant 0 : index
    %80 = vector.load %arg5[%c3, %c0_34, %c0_35] : memref<4x8x32xf32, #tpu.memory_space<vmem>>, vector<1x8x32xf32>
    %81 = vector.shape_cast %80 : vector<1x8x32xf32> to vector<8x32xf32>
    %cst_36 = arith.constant dense<0.000000e+00> : vector<8x32xf32>
    %82 = tpu.matmul %79, %81, %cst_36 {dimension_numbers = #tpu.dot_dimension_numbers<[1], [0], [0], [1], [0, 0, 1, 1], [], []>} : vector<8x8xf32>, vector<8x32xf32>, vector<8x32xf32> -> vector<8x32xf32>
    %83 = arith.addf %64, %82 : vector<8x32xf32>
    %c0_37 = arith.constant 0 : index
    %c0_38 = arith.constant 0 : index
    %84 = vector.load %arg6[%c0_37, %c0_38] : memref<1x32xf32, #tpu.memory_space<vmem>>, vector<1x32xf32>
    %85 = vector.broadcast %84 : vector<1x32xf32> to vector<8x32xf32>
    %86 = arith.addf %83, %85 : vector<8x32xf32>
    %87 = arith.addf %86, %1 : vector<8x32xf32>
    %cst_39 = arith.constant dense<0.000000e+00> : vector<8xf32>
    %88 = vector.multi_reduction <add>, %87, %cst_39 [1] : vector<8x32xf32> to vector<8xf32>
    %89 = vector.shape_cast %88 : vector<8xf32> to vector<8x1xf32>
    %cst_40 = arith.constant 3.200000e+01 : f32
    %90 = vector.broadcast %cst_40 : f32 to vector<8x1xf32>
    %91 = arith.divf %89, %90 : vector<8x1xf32>
    %92 = vector.broadcast %91 : vector<8x1xf32> to vector<8x32xf32>
    %93 = arith.subf %87, %92 : vector<8x32xf32>
    %94 = arith.mulf %93, %93 : vector<8x32xf32>
    %cst_41 = arith.constant dense<0.000000e+00> : vector<8xf32>
    %95 = vector.multi_reduction <add>, %94, %cst_41 [1] : vector<8x32xf32> to vector<8xf32>
    %96 = vector.shape_cast %95 : vector<8xf32> to vector<8x1xf32>
    %cst_42 = arith.constant 3.200000e+01 : f32
    %97 = vector.broadcast %cst_42 : f32 to vector<8x1xf32>
    %98 = arith.divf %96, %97 : vector<8x1xf32>
    %99 = vector.broadcast %91 : vector<8x1xf32> to vector<8x32xf32>
    %100 = arith.subf %87, %99 : vector<8x32xf32>
    %cst_43 = arith.constant 9.99999996E-13 : f32
    %101 = vector.broadcast %cst_43 : f32 to vector<8x1xf32>
    %102 = arith.addf %98, %101 : vector<8x1xf32>
    %103 = math.rsqrt %102 : vector<8x1xf32>
    %104 = vector.broadcast %103 : vector<8x1xf32> to vector<8x32xf32>
    %105 = arith.mulf %100, %104 : vector<8x32xf32>
    %c0_44 = arith.constant 0 : index
    %c0_45 = arith.constant 0 : index
    %106 = vector.load %arg7[%c0_44, %c0_45] : memref<1x32xf32, #tpu.memory_space<vmem>>, vector<1x32xf32>
    %107 = vector.broadcast %106 : vector<1x32xf32> to vector<8x32xf32>
    %108 = arith.mulf %105, %107 : vector<8x32xf32>
    %c0_46 = arith.constant 0 : index
    %c0_47 = arith.constant 0 : index
    %109 = vector.load %arg8[%c0_46, %c0_47] : memref<1x32xf32, #tpu.memory_space<vmem>>, vector<1x32xf32>
    %110 = vector.broadcast %109 : vector<1x32xf32> to vector<8x32xf32>
    %111 = arith.addf %108, %110 : vector<8x32xf32>
    %c0_48 = arith.constant 0 : index
    %c0_49 = arith.constant 0 : index
    %c0_50 = arith.constant 0 : index
    %112 = vector.load %arg9[%c0_48, %c0_49, %c0_50] : memref<1x8x32xf32, #tpu.memory_space<vmem>>, vector<1x8x32xf32>
    %113 = vector.shape_cast %112 : vector<1x8x32xf32> to vector<8x32xf32>
    %114 = vector.shape_cast %111 : vector<8x32xf32> to vector<1x8x32xf32>
    tpu.vector_store %arg9[%c0_48, %c0_49, %c0_50], %114 {strides = array<i32>} : memref<1x8x32xf32, #tpu.memory_space<vmem>>, vector<1x8x32xf32>,
    return
  }
  func.func @transform_0(%arg0: i32, %arg1: i32) -> (i32, i32, i32) {
    %c0_i32 = arith.constant 0 : i32
    %c0_i32_0 = arith.constant 0 : i32
    %c0_i32_1 = arith.constant 0 : i32
    return %arg0, %c0_i32, %c0_i32_0 : i32, i32, i32
  }
  func.func @transform_1(%arg0: i32, %arg1: i32) -> (i32, i32, i32) {
    %c0_i32 = arith.constant 0 : i32
    %c0_i32_0 = arith.constant 0 : i32
    %c0_i32_1 = arith.constant 0 : i32
    return %arg1, %c0_i32, %c0_i32_0 : i32, i32, i32
  }
  func.func @transform_2(%arg0: i32, %arg1: i32) -> (i32, i32, i32) {
    %c0_i32 = arith.constant 0 : i32
    %c0_i32_0 = arith.constant 0 : i32
    %c0_i32_1 = arith.constant 0 : i32
    return %arg1, %c0_i32, %c0_i32_0 : i32, i32, i32
  }
  func.func @transform_3(%arg0: i32, %arg1: i32) -> (i32, i32, i32) {
    %c0_i32 = arith.constant 0 : i32
    %c0_i32_0 = arith.constant 0 : i32
    %c0_i32_1 = arith.constant 0 : i32
    return %arg1, %c0_i32, %c0_i32_0 : i32, i32, i32
  }
  func.func @transform_4(%arg0: i32, %arg1: i32) -> (i32, i32) {
    %c0_i32 = arith.constant 0 : i32
    %c0_i32_0 = arith.constant 0 : i32
    %c0_i32_1 = arith.constant 0 : i32
    return %c0_i32, %c0_i32_0 : i32, i32
  }
  func.func @transform_5(%arg0: i32, %arg1: i32) -> (i32, i32) {
    %c0_i32 = arith.constant 0 : i32
    %c0_i32_0 = arith.constant 0 : i32
    %c0_i32_1 = arith.constant 0 : i32
    return %c0_i32, %c0_i32_0 : i32, i32
  }
  func.func @transform_6(%arg0: i32, %arg1: i32) -> (i32, i32) {
    %c0_i32 = arith.constant 0 : i32
    %c0_i32_0 = arith.constant 0 : i32
    %c0_i32_1 = arith.constant 0 : i32
    return %c0_i32, %c0_i32_0 : i32, i32
  }
  func.func @transform_7(%arg0: i32, %arg1: i32) -> (i32, i32, i32) {
    %c0_i32 = arith.constant 0 : i32
    %c0_i32_0 = arith.constant 0 : i32
    %c0_i32_1 = arith.constant 0 : i32
    return %arg0, %c0_i32, %c0_i32_0 : i32, i32, i32
  }
}

</mosaic_0001>

<bundles_post_ra>
// kernel: tpu_custom_call.1
= control target key start
LH: loop header
LB: loop body
LE: loop exit
PB: predicated region body
PF: predicated region fallthrough
CT: control target
= control target key end

     0   :  { %s2338_s0 = inlined_call_operand.hbm [shape: f32[2,8,32], index: 0, kind: input, shape index: {}]   ;;  %s2339_s1 = inlined_call_operand.hbm [shape: f32[1,32,96], index: 1, kind: input, shape index: {}]   ;;  %s2340_s2 = inlined_call_operand.vmem [shape: f32[1,1,96], index: 2, kind: input, shape index: {}]   ;;  %s2341_s3 = inlined_call_operand.hbm [shape: f32[4,8,32], index: 3, kind: input, shape index: {}]   ;;  %s2342_s4 = inlined_call_operand.vmem [shape: f32[1,32], index: 4, kind: input, shape index: {}]   ;;  %s2343_s5 = inlined_call_operand.vmem [shape: f32[1,32], index: 5, kind: input, shape index: {}]   ;;  %s2344_s6 = inlined_call_operand.vmem [shape: f32[1,32], index: 6, kind: input, shape index: {}]   ;;  %s2345_s7 = inlined_call_operand.hbm [shape: f32[2,8,32], index: 7, kind: output, shape index: {}]  }
   0x1   :  { %2350 = sst [smem:[#allocation13_spill]] %s2339_s1 }
   0x2   :  { %2351 = sst [smem:[#allocation14_spill]] %s2341_s3 }
   0x3   :  { %12 = vsyncpa [#allocation3], 0 }
   0x4   :  { %14 = vsyncpa [#allocation3 + $0x1], 0 }
   0x5   :  { %15 = vsyncpa [#allocation6], 0 }
   0x6   :  { %16 = vsyncpa [#allocation4], 0 }
   0x7   :  { %18 = vsyncpa [#allocation4 + $0x1], 0  ;;  %s2060_s24 = smov 0   ;;  %s2062_s25 = smov 0  }
   0x8   :  { %s2064_s26 = smov 0   ;;  %s2066_s27 = smov 0  }
   0x9   :  { %s2068_s28 = smov 0   ;;  %s2070_s29 = smov 0  }
   0xa LB: > { %s1580_s30 = sadd.s32 4294967295, %s1999_s29   ;;  %s1581_s8 = sadd.s32 4294967294, %s1999_s29   ;;  %s1999_s29 = sphi %s2070_s29, %s24_s29   ;;  %s1995_s28 = sphi %s2068_s28, %s2372_s28   ;;  %s1991_s27 = sphi %s2066_s27, %s2371_s27   ;;  %s1987_s26 = sphi %s2064_s26, %s2370_s26   ;;  %s1983_s25 = sphi %s2062_s25, %s2369_s25   ;;  %s1979_s24 = sphi %s2060_s24, %s2368_s24  }
   0xb   : > { %p56_p0 = scmp.ne.s32.totalorder %s1983_s25, %s1979_s24  ;;  %p2094_p1 = scmp.eq.s32.totalorder %s1580_s30, 0 }
   0xc   : > { %p2098_p2 = scmp.eq.s32.totalorder %s1580_s30, 1  ;;  %p227_p3 = scmp.eq.s32.totalorder %s1581_s8, 1 }
   0xd   : > { %s2352_s9 = scalar_select %p2094_p1, 1, 0 }
   0xe   : > { %p2104_p4 = por %p2094_p1, %p56_p0  ;;  %p1582_p5 = scmp.ge.s32.totalorder %s1999_s29, 1 }
   0xf   : > { %p2109_p6 = por %p227_p3, %p56_p0  ;;  %p234_p7 = scmp.lt.s32.totalorder %s1999_s29, 3 }
  0x10   : > { %s2354_s11 = scalar_select %p2104_p4, 1, 0 }
  0x11   : > { %s2355_s12 = scalar_select %p2109_p6, 1, 0 }
  0x12   : > { %p2114_p8 = pnand %p1582_p5, %p234_p7  ;;  %s2001_s14 = smov [#allocation5]  }
  0x13   : > { %s249_s15 = sshll.u32 %s2001_s14, 4  ;;  %s2002_s17 = smov [#allocation7]   ;;  %s250_s15 = int_to_ptr.vmem [resolvable:$true] %s249_s15 }
  0x14   : > { %p1731_p9 = pneg %p2114_p8  ;;  %s271_s18 = sshll.u32 %s2002_s17, 4  ;;  %s272_s18 = int_to_ptr.vmem [resolvable:$true] %s271_s18 }
  0x15   : > { %s1846_s19 = scalar_lea.vmem %s250_s15, 512  ;;  %p1854_p5 = scmp.lt.s32.totalorder %s250_s15, %s250_s15 }
  0x16   : > { %p2123_p11 = pnand %p1731_p9, %p2094_p1  ;;  %p1847_p13 = scmp.ne.s32.totalorder %s250_s15, %s1846_s19 }
  0x17   : > { %p1855_p7 = scmp.lt.s32.totalorder %s1846_s19, %s1846_s19 }
  0x18   : > { %p1837_p12 = pneg %p2123_p11 }
  0x19   : > { %p1856_p10 = por %p1855_p7, %p1854_p5 }
  0x1a   : > { %p1849_p0 = pnand %p1847_p13, %p1837_p12 }
  0x1c   : > { %p1850_p3 = pneg %p1849_p0 }
  0x1e   : > { %p1857_p9 = pnand %p1856_p10, %p1850_p3 }
  0x20   : > { %1860 = shalt.err (!%p1857_p9)
}
  0x21   : > { %s2003_s20 = smov 128   ;;  %s2004_s21 = smov 8  }
  0x22   : > { %s2358_s1 = sld [smem:[#allocation13_spill]]  ;;  %s1872_s30 = scalar_lea.vmem %s272_s18, 512 }
  0x23   : > { %p1873_p6 = scmp.ne.s32.totalorder %s272_s18, %s1872_s30  ;;  %p1880_p1 = scmp.lt.s32.totalorder %s272_s18, %s272_s18 }
  0x24   : > { %p1881_p4 = scmp.lt.s32.totalorder %s1872_s30, %s1872_s30 }
  0x25   : > { %p1875_p13 = pnand %p1873_p6, %p1837_p12 }
  0x26   : > { %p1882_p5 = por %p1881_p4, %p1880_p1 }
  0x27   : > { %p1876_p0 = pneg %p1875_p13 }
  0x28   : > { %1734 = dma.hbm_to_vmem [thread:$0]  (!%p2123_p11), %s2358_s1, 512, %s250_s15, [#allocation6], %s2003_s20, %s2003_s20, %s2004_s21  }
  0x29   : > { %p1883_p10 = pnand %p1882_p5, %p1876_p0 }
  0x2b   : > { %1886 = shalt.err (!%p1883_p10)
}
  0x2c   : > { %s2359_s3 = sld [smem:[#allocation14_spill]]  ;;  %s36_s15 = sadd.s32 1, %s1995_s28 }
  0x2d   : > { %s43_s17 = sadd.s32 1, %s1987_s26  ;;  %p38_p1 = scmp.ge.s32.totalorder %s36_s15, 2 }
  0x2e   : > { %p50_p4 = scmp.ne.s32.totalorder %s1987_s26, %s1983_s25  ;;  %p51_p6 = scmp.eq.s32.totalorder %s1999_s29, 0 }
  0x2f   : > { %p1748_p12 = scmp.lt.s32.totalorder %s1999_s29, 2  ;;  %s2374_s15 = smov (%p38_p1, %s36_s15), 0 }
  0x30   : > { %2360 = sst [smem:[#allocation12_spill]] %s2374_s15  ;;  %p52_p3 = por %p51_p6, %p50_p4 }
  0x31   : > { %p2155_p7 = por %p2098_p2, %p50_p4  ;;  %s40_s19 = ssub.s32 %s1995_s28, %s2374_s15 }
  0x32   : > { %1737 = dma.hbm_to_vmem [thread:$0]  (!%p2123_p11), %s2359_s3, 512, %s272_s18, [#allocation6], %s2003_s20, %s2003_s20, %s2004_s21  }
  0x33   : > { %s294_s22 = sand.u32 1, %s1987_s26   ;;  %p41_p9 = scmp.eq.s32.totalorder %s40_s19, 0 }
  0x34   : > { %s1587_s18 = sshll.u32 %s294_s22, 3  ;;  %s1588_s20 = sshll.u32 %s1995_s28, 7 }
  0x35   : > { %s2164_s21 = scalar_select %p41_p9, %s1987_s26, %s43_s17  }
  0x36   : > { %s303_s8 = scalar_lea.hbm %s2338_s0, %s1588_s20  ;;  %s298_s14 = scalar_lea.vmem [#allocation2], %s1587_s18 }
  0x37   : > { %s305_s1 = sshll.u32 %s298_s14, 4  ;;  %p2171_p11 = pnand %p1748_p12, %p52_p3  ;;  %s306_s1 = int_to_ptr.vmem [resolvable:$true] %s305_s1 }
  0x38   : > { %s295_s3 = scalar_lea.sflag [#allocation3], %s294_s22  ;;  %s1900_s19 = scalar_lea.vmem %s306_s1, 128 }
  0x39   : > { %p1889_p2 = pneg %p2171_p11  ;;  %p1901_p13 = scmp.ne.s32.totalorder %s306_s1, %s1900_s19 }
  0x3a   : > { %s2005_s17 = smov [#allocation2]  }
  0x3b   : > { %p1903_p0 = pnand %p1901_p13, %p1889_p2  ;;  %s1905_s15 = sshll.u32 %s2005_s17, 4  ;;  %s1906_s15 = int_to_ptr.vmem [resolvable:$false] %s1905_s15 }
  0x3c   : > { %s1907_s20 = scalar_lea.vmem %s1906_s15, 256  ;;  %p1908_p10 = scmp.lt.s32.totalorder %s306_s1, %s1906_s15 }
  0x3d   : > { %p1904_p5 = pneg %p1903_p0  ;;  %p1909_p1 = scmp.lt.s32.totalorder %s1907_s20, %s1900_s19 }
  0x3f   : > { %p1910_p4 = por %p1909_p1, %p1908_p10 }
  0x41   : > { %p1911_p6 = pnand %p1910_p4, %p1904_p5 }
  0x43   : > { %1914 = shalt.err (!%p1911_p6)
}
  0x44   : > { %1741 = dma.hbm_to_vmem [thread:$0]  (!%p2171_p11), %s303_s8, 128, %s306_s1, %s295_s3  }
  0x45   : > { %314 = sbr.rel (%p2114_p8) target bundleno = 2834 (0xb12), region = 48  ;;  %s2182_s22 = sand.u32 (!%p2114_p8), 1, %s1983_s25  }
  0x46   : > { %s1590_s18 = sshll.u32 (!%p2114_p8), %s2182_s22, 3  ;;  %s317_s23 = scalar_lea.sflag (!%p2114_p8), [#allocation3], %s2182_s22 }
  0x47   : > { %s320_s15 = scalar_lea.vmem (!%p2114_p8), [#allocation2], %s1590_s18  ;;  %p2363_p12 = scmp.ne.s32.totalorder (!%p2114_p8), %s2354_s11, 0 }
  0x4a   : > { %1966 = dma.done.wait (%p2363_p12), %s317_s23, 128  }
  0x4b   : > { %1968 = vsyncadd (%p2363_p12), %s317_s23, 4294967168  ;;  %p2364_p3 = scmp.ne.s32.totalorder %s2352_s9, 0 }
  0x4d   : > { %1970 = dma.done.wait (%p2364_p3), [#allocation6], 1024  }
  0x4e   : > { %1972 = vsyncadd (%p2364_p3), [#allocation6], 4294966272  ;;  %v2006_v0 = vmov 0.0   ;;  %vm2007_vm0 = vmmov 0   ;;  %v370_v1 = vld [vmem:[#allocation5 + $0x18] sm:$0xff]  ;;  %v369_v2 = vld [vmem:[#allocation5 + $0x10] sm:$0xff] }
  0x4f   : > { %1648 = vmatprep.subr.mxu0 %v2006_v0  ;;  %1656 = vmatprep.mubr.msk.f32.mxu0 %vm2007_vm0, %v2006_v0  ;;  %v368_v3 = vld [vmem:[#allocation5 + $0x8] sm:$0xff]  ;;  %v367_v4 = vld [vmem:[#allocation5] sm:$0xff]  ;;  %v2204_v5 = vld [vmem:[%s320_s15] sm:$0xff]  ;;  %vm378_vm1 = vcmask 261120   ;;  %s2008_s9 = smov 120   ;;  %s2009_s11 = smov 96  }
  0x50   : > { %1659 = vmatprep.subr.mxu1 %v2006_v0  ;;  %1661 = vmatprep.mubr.msk.f32.mxu1 %vm2007_vm0, %v2006_v0  ;;  %v1594_v6 = vld [vmem:[%s2340_s2] ss:$0 sm:$0xff]  ;;  %s2010_s13 = smov 88   ;;  %vm455_vm2 = vcmask 64512   ;;  %s2011_s30 = smov 56   ;;  %v617_v37 = vld [vmem:[#allocation7] sm:$0xff] }
  0x51   : > { %1649 = vmatpush3.msra.mxu0 %v370_v1  ;;  %s2012_s8 = smov 64   ;;  %s2013_s14 = smov 80   ;;  %v784_v38 = vld [vmem:[#allocation7 + $0x8] sm:$0xff]  ;;  %v1097_v1 = vld [vmem:[#allocation7 + $0x10] sm:$0xff] }
  0x52   : > { %1650 = vmatprep.subr.mxu0 %v2006_v0  ;;  %s2014_s10 = smov 112   ;;  %s2015_s19 = smov 72  }
  0x53   : > { %1651 = vmatpush3.msra.mxu0 %v369_v2  ;;  %s2016_s17 = smov 104   ;;  %s2017_s20 = smov 48  }
  0x54   : > { %1652 = vmatprep.subr.mxu0 %v2006_v0  ;;  %s2018_s23 = smov 40   ;;  %s2019_s15 = smov [#allocation8]  }
  0x55   : > { %1653 = vmatpush3.msra.mxu0 %v368_v3 }
  0x56   : > { %1654 = vmatprep.subr.mxu0 %v2006_v0 }
  0x57   : > { %1655 = vmatpush3.msra.mxu0 %v367_v4 }
  0x58   : > { %1657 = vmatmul.mubr.msk.f32.vlgmr.msra.gmra.mxu0 %vm378_vm1, %v2204_v5  ;;  %1669 = vmatprep.subr.mxu0 %v2006_v0 }
  0x59   : > { %1671 = vmatprep.mubr.msk.f32.mxu0 %vm2007_vm0, %v2006_v0 }
 0x118   : > { %v448_v7 = vpop.f32.mrf.mxu0 }
 0x119   : > { %v2215_v8 = vadd.f32 %v1594_v6, %v448_v7 }
 0x11a   : > { %v1658_v9 = vpop.f32.mrf.mxu0 }
 0x11b   : > { %618 = vrot.lane.b32.xlu1 %v2215_v8, %s2008_s9  ;;  %453 = vrot.lane.b32.xlu0 %v2215_v8, %s2009_s11 }
 0x11f   : > { %620 = vrot.lane.b32.xlu0 %v2215_v8, %s2010_s13 }
 0x18d   : > { %v454_v10 = vpop.permute.xlu0 %453  ;;  %v619_v12 = vpop.permute.xlu1 %618 }
 0x18e   : > { %1660 = vmatpush3.xpose.msk.msra.mxu1 %vm455_vm2, %v454_v10 }
 0x18f   : > { %1664 = vmatprep.subr.mxu1 %v2006_v0 }
 0x191   : > { %1662 = vmatmul.mubr.msk.f32.vlgmr.msra.gmra.mxu1 %vm455_vm2, %v2215_v8  ;;  %v621_v11 = vpop.permute.xlu0 %620 }
 0x192   : > { %1670 = vmatpush3.xpose.msk.msra.mxu0 %vm455_vm2, %v621_v11  ;;  %1666 = vmatprep.mubr.msk.f32.mxu1 %vm2007_vm0, %v2006_v0 }
 0x193   : > { %1679 = vmatprep.subr.mxu0 %v2006_v0 }
 0x195   : > { %1672 = vmatmul.mubr.msk.f32.vlgmr.msra.gmra.mxu0 %vm455_vm2, %v619_v12 }
 0x196   : > { %1681 = vmatprep.mubr.msk.f32.mxu0 %vm2007_vm0, %v2006_v0  ;;  %1680 = vmatpush3.msra.mxu0 %v784_v38 }
 0x197   : > { %1689 = vmatprep.subr.mxu0 %v2006_v0 }
 0x251   : > { %v526_v13 = vpop.f32.mrf.mxu1 }
 0x252   : > { %v530_v14 = vsel %vm455_vm2, %v526_v13, -inf }
 0x253   : > { %531 = vmax.xlane.f32.xlu1 %v530_v14  ;;  %v1663_v15 = vpop.f32.mrf.mxu1 }
 0x254   : > { %v1338_v15 = vld [vmem:[#allocation7 + $0x18] sm:$0xff] }
 0x255   : > { %v692_v16 = vpop.f32.mrf.mxu0 }
 0x256   : > { %v696_v17 = vsel %vm455_vm2, %v692_v16, -inf }
 0x257   : > { %697 = vmax.xlane.f32.xlu0 %v696_v17  ;;  %v1673_v18 = vpop.f32.mrf.mxu0 }
 0x2dc   : > { %v532_v19 = vpop.xlane.xlu1 %531 }
 0x2dd   : > { %v533_v20 = vsub.f32 %v526_v13, %v532_v19 }
 0x2df   : > { %v534_v21 = vmul.f32 1.442695, %v533_v20 }
 0x2e0   : > { %v698_v22 = vpop.xlane.xlu0 %697 }
 0x2e1   : > { %1817 = vpow2.f32 %v534_v21  ;;  %v699_v23 = vsub.f32 %v692_v16, %v698_v22 }
 0x2e3   : > { %v700_v24 = vmul.f32 1.442695, %v699_v23  ;;  %v1612_v23 = vld [vmem:[%s2342_s4] ss:$0 sm:$0xff] }
 0x2e5   : > { %1819 = vpow2.f32 %v700_v24 }
 0x2ee   : > { %v1818_v25 = vpop.eup %1817 }
 0x2ef   : > { %v536_v26 = vsel %vm455_vm2, %v1818_v25, 0.0 }
 0x2f0   : > { %537 = vadd.xlane.f32.xlu0 %v536_v26 }
 0x2f2   : > { %v1820_v27 = vpop.eup %1819 }
 0x2f3   : > { %v702_v28 = vsel %vm455_vm2, %v1820_v27, 0.0 }
 0x2f4   : > { %703 = vadd.xlane.f32.xlu1 %v702_v28 }
 0x305   : > { %707 = vrot.lane.b32.xlu1 %v2215_v8, %s2011_s30  ;;  %s1616_s30 = sshll.u32 %s1991_s27, 7  ;;  %s1919_s27 = sshll.u32 %s2019_s15, 4  ;;  %s1920_s27 = int_to_ptr.vmem [resolvable:$false] %s1919_s27 }
 0x306   : > { %541 = vrot.lane.b32.xlu0 %v2215_v8, %s2012_s8  ;;  %s361_s8 = scalar_lea.vmem [#allocation8], %s1590_s18  ;;  %s1921_s18 = scalar_lea.vmem %s1920_s27, 256 }
 0x309   : > { %933 = vrot.lane.b32.xlu1 %v2215_v8, %s2013_s14  ;;  %s1467_s14 = sshll.u32 %s361_s8, 4  ;;  %s1468_s14 = int_to_ptr.vmem [resolvable:$true] %s1467_s14 }
 0x30a   : > { %931 = vrot.lane.b32.xlu0 %v2215_v8, %s2014_s10  ;;  %p1922_p2 = scmp.lt.s32.totalorder %s1468_s14, %s1920_s27 }
 0x379   : > { %v538_v29 = vpop.xlane.xlu0 %537 }
 0x37a   : > { %1821 = vrcp.f32 %v538_v29 }
 0x37d   : > { %v704_v30 = vpop.xlane.xlu1 %703  ;;  %v542_v31 = vpop.permute.xlu0 %541 }
 0x37e   : > { %1823 = vrcp.f32 %v704_v30  ;;  %1665 = vmatpush3.msra.mxu1 %v542_v31 }
 0x37f   : > { %1674 = vmatprep.subr.mxu1 %v2006_v0 }
 0x381   : > { %v708_v34 = vpop.permute.xlu1 %707  ;;  %v932_v44 = vpop.permute.xlu0 %931 }
 0x385   : > { %v934_v42 = vpop.permute.xlu1 %933 }
 0x387   : > { %v1822_v32 = vpop.eup %1821 }
 0x388   : > { %v540_v33 = vmul.f32 %v1822_v32, %v1818_v25 }
 0x38a   : > { %1667 = vmatmul.mubr.msk.f32.vlgmr.msra.gmra.mxu1 %vm455_vm2, %v540_v33 }
 0x38b   : > { %v1824_v35 = vpop.eup %1823  ;;  %1675 = vmatpush3.msra.mxu1 %v708_v34  ;;  %1676 = vmatprep.mubr.msk.f32.mxu1 %vm2007_vm0, %v2006_v0 }
 0x38c   : > { %v706_v36 = vmul.f32 %v1824_v35, %v1820_v27  ;;  %1684 = vmatprep.subr.mxu1 %v2006_v0 }
 0x38e   : > { %1677 = vmatmul.mubr.msk.f32.vlgmr.msra.gmra.mxu1 %vm455_vm2, %v706_v36 }
 0x38f   : > { %1686 = vmatprep.mubr.msk.f32.mxu1 %vm2007_vm0, %v2006_v0  ;;  %1685 = vmatpush3.msra.mxu1 %v617_v37 }
 0x390   : > { %1694 = vmatprep.subr.mxu1 %v2006_v0 }
 0x44a   : > { %v613_v39 = vpop.f32.mrf.mxu1 }
 0x44b   : > { %1687 = vmatmul.mubr.msk.f32.vlgmr.msra.gmra.mxu1 %vm455_vm2, %v613_v39  ;;  %v1614_v39 = vld [vmem:[%s2344_s6] ss:$0 sm:$0xff] }
 0x44c   : > { %v1668_v40 = vpop.f32.mrf.mxu1  ;;  %1696 = vmatprep.mubr.msk.f32.mxu1 %vm2007_vm0, %v2006_v0 }
 0x44e   : > { %v779_v41 = vpop.f32.mrf.mxu1 }
 0x44f   : > { %1682 = vmatmul.mubr.msk.f32.vlgmr.msra.gmra.mxu0 %vm455_vm2, %v779_v41 }
 0x450   : > { %1690 = vmatpush3.xpose.msk.msra.mxu0 %vm455_vm2, %v934_v42  ;;  %v1678_v43 = vpop.f32.mrf.mxu1  ;;  %1691 = vmatprep.mubr.msk.f32.mxu0 %vm2007_vm0, %v2006_v0 }
 0x451   : > { %1699 = vmatprep.subr.mxu0 %v2006_v0 }
 0x453   : > { %1692 = vmatmul.mubr.msk.f32.vlgmr.msra.gmra.mxu0 %vm455_vm2, %v932_v44 }
 0x454   : > { %1701 = vmatprep.mubr.msk.f32.mxu0 %vm2007_vm0, %v2006_v0  ;;  %1700 = vmatpush3.msra.mxu0 %v1097_v1 }
 0x455   : > { %1709 = vmatprep.subr.mxu0 %v2006_v0 }
 0x50b   : > { %v927_v45 = vpop.f32.mrf.mxu1 }
 0x50d   : > { %v1688_v46 = vpop.f32.mrf.mxu1 }
 0x50f   : > { %v854_v47 = vpop.f32.mrf.mxu0 }
 0x510   : > { %v928_v48 = vadd.f32 %v927_v45, %v854_v47 }
 0x511   : > { %v1683_v49 = vpop.f32.mrf.mxu0 }
 0x513   : > { %v1005_v50 = vpop.f32.mrf.mxu0 }
 0x514   : > { %v1009_v51 = vsel %vm455_vm2, %v1005_v50, -inf }
 0x515   : > { %1010 = vmax.xlane.f32.xlu1 %v1009_v51  ;;  %v1693_v52 = vpop.f32.mrf.mxu0 }
 0x526   : > { %1174 = vrot.lane.b32.xlu1 %v2215_v8, %s2015_s19 }
 0x52a   : > { %1172 = vrot.lane.b32.xlu1 %v2215_v8, %s2016_s17  ;;  %s1465_s17 = scalar_lea.hbm %s2345_s7, %s1616_s30 }
 0x59e   : > { %v1011_v53 = vpop.xlane.xlu1 %1010 }
 0x59f   : > { %v1012_v54 = vsub.f32 %v1005_v50, %v1011_v53 }
 0x5a1   : > { %v1013_v55 = vmul.f32 1.442695, %v1012_v54 }
 0x5a2   : > { %v1175_v61 = vpop.permute.xlu1 %1174 }
 0x5a3   : > { %1825 = vpow2.f32 %v1013_v55 }
 0x5a6   : > { %v1173_v63 = vpop.permute.xlu1 %1172 }
 0x5b0   : > { %v1826_v56 = vpop.eup %1825 }
 0x5b1   : > { %v1015_v57 = vsel %vm455_vm2, %v1826_v56, 0.0 }
 0x5b2   : > { %1016 = vadd.xlane.f32.xlu0 %v1015_v57 }
 0x5c8   : > { %1020 = vrot.lane.b32.xlu0 %v2215_v8, %s2017_s20  ;;  %s1454_s20 = scalar_lea.sflag [#allocation4], %s2182_s22 }
 0x63b   : > { %v1017_v58 = vpop.xlane.xlu0 %1016 }
 0x63c   : > { %1827 = vrcp.f32 %v1017_v58 }
 0x63f   : > { %v1021_v59 = vpop.permute.xlu0 %1020 }
 0x640   : > { %1695 = vmatpush3.msra.mxu1 %v1021_v59 }
 0x641   : > { %1704 = vmatprep.subr.mxu1 %v2006_v0 }
 0x649   : > { %v1828_v60 = vpop.eup %1827 }
 0x64a   : > { %v1019_v62 = vmul.f32 %v1828_v60, %v1826_v56 }
 0x64c   : > { %1697 = vmatmul.mubr.msk.f32.vlgmr.msra.gmra.mxu1 %vm455_vm2, %v1019_v62 }
 0x64d   : > { %1705 = vmatpush3.xpose.msk.msra.mxu1 %vm455_vm2, %v1175_v61  ;;  %1706 = vmatprep.mubr.msk.f32.mxu1 %vm2007_vm0, %v2006_v0 }
 0x64e   : > { %1714 = vmatprep.subr.mxu1 %v2006_v0 }
 0x650   : > { %1707 = vmatmul.mubr.msk.f32.vlgmr.msra.gmra.mxu1 %vm455_vm2, %v1173_v63 }
 0x651   : > { %1716 = vmatprep.mubr.msk.f32.mxu1 %vm2007_vm0, %v2006_v0  ;;  %1715 = vmatpush3.msra.mxu1 %v1338_v15 }
 0x70c   : > { %v1092_v2 = vpop.f32.mrf.mxu1 }
 0x70d   : > { %1702 = vmatmul.mubr.msk.f32.vlgmr.msra.gmra.mxu0 %vm455_vm2, %v1092_v2 }
 0x70e   : > { %v1698_v3 = vpop.f32.mrf.mxu1  ;;  %1711 = vmatprep.mubr.msk.f32.mxu0 %vm2007_vm0, %v2006_v0 }
 0x710   : > { %v1246_v4 = vpop.f32.mrf.mxu1 }
 0x711   : > { %v1250_v6 = vsel %vm455_vm2, %v1246_v4, -inf }
 0x712   : > { %1251 = vmax.xlane.f32.xlu0 %v1250_v6  ;;  %v1708_v7 = vpop.f32.mrf.mxu1 }
 0x728   : > { %1261 = vrot.lane.b32.xlu0 %v2215_v8, %s2018_s23  ;;  %s1915_s23 = scalar_lea.vmem %s1468_s14, 128 }
 0x729   : > { %p1916_p8 = scmp.ne.s32.totalorder %s1468_s14, %s1915_s23  ;;  %p1923_p13 = scmp.lt.s32.totalorder %s1921_s18, %s1915_s23 }
 0x72b   : > { %p1917_p9 = pnand %p1916_p8, %p2155_p7  ;;  %p1924_p0 = por %p1923_p13, %p1922_p2 }
 0x72d   : > { %p1918_p11 = pneg %p1917_p9 }
 0x72f   : > { %p1925_p5 = pnand %p1924_p0, %p1918_p11 }
 0x79b   : > { %v1252_v9 = vpop.xlane.xlu0 %1251 }
 0x79c   : > { %v1253_v10 = vsub.f32 %v1246_v4, %v1252_v9 }
 0x79e   : > { %v1254_v11 = vmul.f32 1.442695, %v1253_v10 }
 0x79f   : > { %v1262_v12 = vpop.permute.xlu0 %1261 }
 0x7a0   : > { %1829 = vpow2.f32 %v1254_v11  ;;  %1710 = vmatpush3.msra.mxu0 %v1262_v12 }
 0x7ad   : > { %v1830_v13 = vpop.eup %1829 }
 0x7ae   : > { %v1256_v14 = vsel %vm455_vm2, %v1830_v13, 0.0 }
 0x7af   : > { %1257 = vadd.xlane.f32.xlu1 %v1256_v14 }
 0x7cd   : > { %v1167_v0 = vpop.f32.mrf.mxu0 }
 0x7ce   : > { %v1171_v16 = vadd.f32 %v1167_v0, %v928_v48 }
 0x7cf   : > { %v1703_v17 = vpop.f32.mrf.mxu0 }
 0x838   : > { %v1258_v18 = vpop.xlane.xlu1 %1257 }
 0x839   : > { %1831 = vrcp.f32 %v1258_v18 }
 0x846   : > { %v1832_v19 = vpop.eup %1831 }
 0x847   : > { %v1260_v20 = vmul.f32 %v1832_v19, %v1830_v13 }
 0x849   : > { %1712 = vmatmul.mubr.msk.f32.vlgmr.msra.gmra.mxu0 %vm455_vm2, %v1260_v20 }
 0x909   : > { %v1333_v8 = vpop.f32.mrf.mxu0 }
 0x90a   : > { %1717 = vmatmul.mubr.msk.f32.vlgmr.msra.gmra.mxu1 %vm455_vm2, %v1333_v8 }
 0x90b   : > { %v1713_v21 = vpop.f32.mrf.mxu0 }
 0x9ca   : > { %v1408_v22 = vpop.f32.mrf.mxu1 }
 0x9cb   : > { %v1412_v24 = vadd.f32 %v1408_v22, %v1171_v16 }
 0x9cc   : > { %v1718_v25 = vpop.f32.mrf.mxu1 }
 0x9cd   : > { %v1420_v26 = vadd.f32 %v1612_v23, %v1412_v24 }
 0x9cf   : > { %v1421_v27 = vadd.f32 %v1420_v26, %v2204_v5  ;;  %v1613_v5 = vld [vmem:[%s2343_s5] ss:$0 sm:$0xff] }
 0x9d1   : > { %v1422_v28 = vsel %vm378_vm1, %v1421_v27, 0.0 }
 0x9d2   : > { %1423 = vadd.xlane.f32.xlu1 %v1422_v28 }
 0xa5b   : > { %v1424_v29 = vpop.xlane.xlu1 %1423 }
 0xa5c   : > { %v1426_v30 = vmul.f32 0.03125, %v1424_v29 }
 0xa5e   : > { %v1427_v31 = vsub.f32 %v1421_v27, %v1426_v30 }
 0xa60   : > { %v1428_v32 = vmul.f32 %v1427_v31, %v1427_v31 }
 0xa62   : > { %v1429_v33 = vsel %vm378_vm1, %v1428_v32, 0.0 }
 0xa63   : > { %1430 = vadd.xlane.f32.xlu1 %v1429_v33 }
 0xaec   : > { %v1431_v34 = vpop.xlane.xlu1 %1430 }
 0xaed   : > { %v1432_v35 = vmul.f32 0.03125, %v1431_v34 }
 0xaef   : > { %v1433_v36 = vadd.f32 1e-12, %v1432_v35 }
 0xaf1   : > { %1833 = vrsqrt.f32 %v1433_v36 }
 0xafe   : > { %v1834_v37 = vpop.eup %1833 }
 0xaff   : > { %v1435_v38 = vmul.f32 %v1834_v37, %v1427_v31 }
 0xb01   : > { %v1443_v40 = vmul.f32 %v1613_v5, %v1435_v38 }
 0xb03   : > { %v1451_v41 = vadd.f32 %v1614_v39, %v1443_v40 }
 0xb05   : > { %1452 = vst.msk [vmem:[%s361_s8] sm:$0xff] %vm378_vm1, %v1451_v41 }
 0xb06   : > { %1928 = shalt.err (!%p1925_p5)
}
 0xb07   : > { %s1929_s1 = scalar_lea.hbm %s1465_s17, 128  ;;  %s1933_s9 = scalar_lea.hbm %s2345_s7, 256 }
 0xb08   : > { %p1930_p10 = scmp.ne.s32.totalorder %s1465_s17, %s1929_s1  ;;  %p1934_p6 = scmp.lt.s32.totalorder %s1465_s17, %s2345_s7 }
 0xb09   : > { %p1935_p12 = scmp.lt.s32.totalorder %s1933_s9, %s1929_s1 }
 0xb0a   : > { %p1931_p1 = pnand %p1930_p10, %p2155_p7 }
 0xb0b   : > { %p1936_p3 = por %p1935_p12, %p1934_p6 }
 0xb0c   : > { %p1932_p4 = pneg %p1931_p1 }
 0xb0e   : > { %p1937_p8 = pnand %p1936_p3, %p1932_p4 }
 0xb10   : > { %1940 = shalt.err (!%p1937_p8)
}
 0xb11   : > { %1729 = dma.vmem_to_hbm [thread:$0]  (%p2155_p7), %s1468_s14, 128, %s1465_s17, %s1454_s20  }
 0xb12 PF: > { %s1479_s30 = sand.u32 1, %s1979_s24   ;;  %p2365_p9 = scmp.ne.s32.totalorder %s2355_s12, 0 }
 0xb13   : > { %p2366_p11 = scmp.ge.s32.totalorder %s1999_s29, 2  ;;  %s1480_s8 = scalar_lea.sflag [#allocation4], %s1479_s30 }
 0xb15   : > { %p1743_p2 = pnand %p2366_p11, %p2365_p9 }
 0xb17   : > { %p1744_p13 = pneg %p1743_p2 }
 0xb19   : > { %1974 = dma.done.wait (%p1744_p13), %s1480_s8, 128  }
 0xb1a   : > { %1976 = vsyncadd (%p1744_p13), %s1480_s8, 4294967168  ;;  %s24_s29 = sadd.s32 1, %s1999_s29   ;;  %s2367_s16 = sld [smem:[#allocation12_spill]] }
 0xb1b   : > { %p21_p0 = scmp.ge.s32.totalorder %s24_s29, 4   ;;  %s2368_s24 = smov %s1983_s25 }
 0xb1c   : > { %s2369_s25 = smov %s1987_s26  ;;  %s2370_s26 = smov %s2164_s21 }
 0xb1d   : > { %s2371_s27 = smov %s1995_s28  ;;  %23 = sbr.rel (!%p21_p0) target bundleno = 10 (0xa), region = 109 }
 0xb20   : > { %s2372_s28 = smov %s2367_s16 }
 0xb22   :  { %1485 = vsyncpa [#allocation3], 1 }
 0xb23   :  { %1487 = vsyncpa [#allocation3 + $0x1], 1 }
 0xb24   :  { %1488 = vsyncpa [#allocation6], 1 }
 0xb25   :  { %1489 = vsyncpa [#allocation4], 1 }
 0xb26   :  { %1491 = vsyncpa [#allocation4 + $0x1], 1 }

</bundles_post_ra>
